<compile_context>
chip_gen: v7x
topology: tpu7x:2x2x1
jax: 0.10.0
libtpu: 0.0.40
codegen_flags: <defaults>
</compile_context>

<pallas_src>
import jax
import jax.numpy as jnp
from jax import lax
from jax.experimental import pallas as pl
from jax.experimental.pallas import tpu as pltpu


def _round_up(x, m):
    return (x + m - 1) // m * m


def _pick_batch_tile(n, bytes_per_batch, target_bytes=2 << 20, max_tile=8):
    """Largest divisor of n (<= max_tile) whose block is <= ~target_bytes."""
    want = int(max(1, min(n, max_tile, target_bytes // max(bytes_per_batch, 1))))
    for b in range(want, 0, -1):
        if n % b == 0:
            return b
    return 1


def _vmem_limit_bytes():
    """Generation-aware VMEM budget: half of physical capacity, floor 32 MiB, cap 96 MiB."""
    try:
        cap = int(pltpu.get_tpu_info().vmem_capacity_bytes)
    except Exception:
        cap = 64 * 1024 * 1024
    return int(max(32 * 1024 * 1024, min(cap // 2, 96 * 1024 * 1024)))


# ---------------------------------------------------------------------------
# Fused kernel: 4 space-to-depth conv taps (MXU, f32 acc) + folded-BN bias + ReLU.
# One grid step == B_tile batch elements; weights/bias are VMEM-resident.
# ---------------------------------------------------------------------------
def _make_conv_bn_relu_kernel(b_tile, mo, ws8):
    shifts = (0, 1, ws8, ws8 + 1)  # flat row offsets of the 4 s2d taps (dY*Ws8 + dX)

    def kernel(x_ref, w_ref, b_ref, o_ref):
        # x_ref: (B_tile, Mp, K4)       bf16  flattened s2d images
        # w_ref: (4, K4, Cout_p)        bf16  BN-scale-folded tap weights (resident)
        # b_ref: (1, Cout_p)            f32   folded BN bias (resident)
        # o_ref: (B_tile, Mo, Cout_p)   bf16
        bias = b_ref[...]
        for b in range(b_tile):
            # acc initialized from the first tap's dot (no zeros + add).
            acc = jnp.dot(x_ref[b, 0:mo, :], w_ref[0],
                          preferred_element_type=jnp.float32)
            for t in range(1, 4):
                s = shifts[t]
                acc = acc + jnp.dot(x_ref[b, s:s + mo, :], w_ref[t],
                                    preferred_element_type=jnp.float32)
            o_ref[b] = jnp.maximum(acc + bias, 0.0).astype(o_ref.dtype)

    return kernel


# ---------------------------------------------------------------------------
# ConvBlock forward (eval-mode BN folded), Pallas path. Returns bf16 NCHW.
# ---------------------------------------------------------------------------
def conv_block_forward(params, x_nchw, eps=1e-5):
    w = params["w"].astype(jnp.float32)               # (Cout, Cin, 3, 3)
    N, Cin, H, W = x_nchw.shape
    Cout = w.shape[0]
    assert w.shape == (Cout, Cin, 3, 3), w.shape

    # ---- BN folding (eval mode) ----
    scale = params["gamma"] / jnp.sqrt(params["var"] + eps)
    bias = params["beta"] - params["mean"] * scale

    # ---- pad Cout to a multiple of 128: lane-dense unmasked output stores ----
    Cout_p = _round_up(Cout, 128)
    if Cout_p != Cout:
        pc = Cout_p - Cout
        scale = jnp.pad(scale, (0, pc))
        bias = jnp.pad(bias, (0, pc))
        w = jnp.pad(w, ((0, pc), (0, 0), (0, 0), (0, 0)))
    bias2 = bias.reshape(1, Cout_p).astype(jnp.float32)

    # ---- fold BN scale into weights; rearrange 3x3/s2 -> 4 taps of 2x2/s1 s2d weights ----
    wt = jnp.transpose(w, (2, 3, 1, 0)) * scale[None, None, None, :]   # (ky,kx,Ci,Co)
    wp = jnp.pad(wt, ((0, 1), (0, 1), (0, 0), (0, 0)))                 # (4,4,Ci,Co), zero taps
    w6 = wp.reshape(2, 2, 2, 2, Cin, Cout_p)                           # (dY,py,dX,px,Ci,Co)
    w6 = jnp.transpose(w6, (0, 2, 1, 3, 4, 5))                         # (dY,dX,py,px,Ci,Co)
    K4 = 4 * Cin
    w2 = w6.reshape(4, K4, Cout_p).astype(jnp.bfloat16)                # tap-major, K=(py,px,ci)

    # ---- space-to-depth input: cast to bf16 FIRST so all glue passes are half-width ----
    xb = x_nchw.astype(jnp.bfloat16)
    x_nhwc = jnp.transpose(xb, (0, 2, 3, 1))
    pad_b, pad_r = 1 + (H % 2), 1 + (W % 2)                            # conv pad=1, round to even
    xp = jnp.pad(x_nhwc, ((0, 0), (1, pad_b), (1, pad_r), (0, 0)))
    Hp, Wp = H + 1 + pad_b, W + 1 + pad_r
    Hs, Ws = Hp // 2, Wp // 2
    Ws8 = _round_up(Ws, 8)                                             # sublane-align dy=1 taps
    xs = xp.reshape(N, Hs, 2, Ws, 2, Cin)
    xs = jnp.transpose(xs, (0, 1, 3, 2, 4, 5)).reshape(N, Hs, Ws, K4)
    # zero-pad width -> Ws8 and add one zero halo row so all tap slices stay in range.
    xs = jnp.pad(xs, ((0, 0), (0, 1), (0, Ws8 - Ws), (0, 0)))
    Mp = (Hs + 1) * Ws8
    x_flat = xs.reshape(N, Mp, K4)                                     # bf16

    Ho, Wo = Hs - 1, Ws - 1                                            # true conv output size
    Mo = Ho * Ws8                                                      # kernel keeps full-Ws8 rows
    # NOTE: the dx=1 taps of the last kept column wrap onto the next s2d row; those columns
    # (j >= Wo) are junk by construction and MUST stay cropped below.

    # ---- batch tiling: amortize per-grid-step overhead with MiB-scale blocks ----
    bytes_per_batch = Mp * K4 * 2 + Mo * Cout_p * 2
    B_tile = _pick_batch_tile(N, bytes_per_batch)

    kernel = _make_conv_bn_relu_kernel(B_tile, Mo, Ws8)
    out_flat = pl.pallas_call(
        kernel,
        out_shape=jax.ShapeDtypeStruct((N, Mo, Cout_p), jnp.bfloat16),
        grid_spec=pltpu.PrefetchScalarGridSpec(
            num_scalar_prefetch=0,
            grid=(N // B_tile,),
            in_specs=[
                pl.BlockSpec((B_tile, Mp, K4), lambda g: (g, 0, 0)),    # batch-tile image block
                pl.BlockSpec((4, K4, Cout_p), lambda g: (0, 0, 0)),     # weights: resident
                pl.BlockSpec((1, Cout_p), lambda g: (0, 0)),            # bias: resident
            ],
            out_specs=pl.BlockSpec((B_tile, Mo, Cout_p), lambda g: (g, 0, 0)),
        ),
        compiler_params=pltpu.CompilerParams(
            dimension_semantics=("parallel",),
            vmem_limit_bytes=_vmem_limit_bytes()),
    )(x_flat, w2, bias2)

    # ---- crop junk columns / padded channels + NHWC->NCHW in one fused bf16 pass ----
    out = out_flat.reshape(N, Ho, Ws8, Cout_p)
    out = jnp.transpose(out, (0, 3, 1, 2))[:, :Cout, :, :Wo]
    return out                                                          # bf16, (N, Cout, Ho, Wo)


# ---------------------------------------------------------------------------
# Reference: lax.conv on the same bf16-rounded inputs/folded weights (f32 math).
# ---------------------------------------------------------------------------
def reference_forward(params, x_nchw, eps=1e-5):
    scale = params["gamma"] / jnp.sqrt(params["var"] + eps)
    bias = params["beta"] - params["mean"] * scale
    xq = x_nchw.astype(jnp.bfloat16).astype(jnp.float32)
    wq = (params["w"] * scale[:, None, None, None]).astype(jnp.bfloat16).astype(jnp.float32)
    y = lax.conv_general_dilated(xq, wq, window_strides=(2, 2),
                                 padding=((1, 1), (1, 1)),
                                 dimension_numbers=("NCHW", "OIHW", "NCHW"),
                                 precision=lax.Precision.HIGHEST)
    y = y + bias[None, :, None, None]
    return jnp.maximum(y, 0.0)


if __name__ == "__main__":
    key = jax.random.PRNGKey(0)
    kx, kw, kg, kb, km, kv = jax.random.split(key, 6)

    N, Cin, H, W = 2, 32, 16, 16
    Cout = 128                                       # lane-dense output channels

    x = jax.random.normal(kx, (N, Cin, H, W), jnp.float32)
    params = {
        "w": 0.1 * jax.random.normal(kw, (Cout, Cin, 3, 3), jnp.float32),
        "gamma": 1.0 + 0.1 * jax.random.normal(kg, (Cout,), jnp.float32),
        "beta": 0.1 * jax.random.normal(kb, (Cout,), jnp.float32),
        "mean": 0.1 * jax.random.normal(km, (Cout,), jnp.float32),
        "var": 0.5 + jnp.abs(jax.random.normal(kv, (Cout,), jnp.float32)),
    }

    out = jax.jit(conv_block_forward)(params, x)
    out = jax.block_until_ready(out)

    ref = reference_forward(params, x)
    Ho = (H + 2 - 3) // 2 + 1
    Wo = (W + 2 - 3) // 2 + 1
    assert out.shape == (N, Cout, Ho, Wo), out.shape
    assert out.dtype == jnp.bfloat16, out.dtype
    err = float(jnp.max(jnp.abs(out.astype(jnp.float32) - ref)))
    if not bool(jnp.allclose(out.astype(jnp.float32), ref, atol=2e-2, rtol=2e-2)):
        raise AssertionError(f"Pallas output mismatch, max abs err = {err}")

    print("KERNEL_OK")
</pallas_src>

<mosaic_0001>
module attributes {stable_mosaic.version = 11 : i64} {
  func.func @kernel(%arg0: i32, %arg1: memref<2x160x128xbf16, #tpu.memory_space<vmem>>, %arg2: memref<4x128x128xbf16, #tpu.memory_space<vmem>>, %arg3: memref<1x128xf32, #tpu.memory_space<vmem>>, %arg4: memref<2x128x128xbf16, #tpu.memory_space<vmem>>) attributes {dimension_semantics = [#tpu.dimension_semantics<parallel>], iteration_bounds = array<i64: 1>, scalar_prefetch = 0 : i64, scratch_operands = 0 : i64, tpu.core_type = #tpu.core_type<tc>, window_params = [{transform_indices = @transform_0, window_bounds = array<i64: 2, 160, 128>}, {pipeline_mode = #tpu.pipeline_mode<synchronous>, transform_indices = @transform_1, window_bounds = array<i64: 4, 128, 128>}, {pipeline_mode = #tpu.pipeline_mode<synchronous>, transform_indices = @transform_2, window_bounds = array<i64: 1, 128>}, {transform_indices = @transform_3, window_bounds = array<i64: 2, 128, 128>}]} {
    %c0 = arith.constant 0 : index
    %c0_0 = arith.constant 0 : index
    %0 = vector.load %arg3[%c0, %c0_0] : memref<1x128xf32, #tpu.memory_space<vmem>>, vector<1x128xf32>
    %c0_1 = arith.constant 0 : index
    %c0_2 = arith.constant 0 : index
    %c0_3 = arith.constant 0 : index
    %1 = vector.load %arg1[%c0_1, %c0_2, %c0_3] : memref<2x160x128xbf16, #tpu.memory_space<vmem>>, vector<1x128x128xbf16>
    %2 = vector.shape_cast %1 : vector<1x128x128xbf16> to vector<128x128xbf16>
    %c0_4 = arith.constant 0 : index
    %c0_5 = arith.constant 0 : index
    %c0_6 = arith.constant 0 : index
    %3 = vector.load %arg2[%c0_4, %c0_5, %c0_6] : memref<4x128x128xbf16, #tpu.memory_space<vmem>>, vector<1x128x128xbf16>
    %4 = vector.shape_cast %3 : vector<1x128x128xbf16> to vector<128x128xbf16>
    %cst = arith.constant dense<0.000000e+00> : vector<128x128xf32>
    %5 = tpu.matmul %2, %4, %cst {dimension_numbers = #tpu.dot_dimension_numbers<[1], [0], [0], [1], [0, 0, 1, 1], [], []>} : vector<128x128xbf16>, vector<128x128xbf16>, vector<128x128xf32> -> vector<128x128xf32>
    %c0_7 = arith.constant 0 : index
    %c1 = arith.constant 1 : index
    %c0_8 = arith.constant 0 : index
    %6 = vector.load %arg1[%c0_7, %c1, %c0_8] : memref<2x160x128xbf16, #tpu.memory_space<vmem>>, vector<1x128x128xbf16>
    %7 = vector.shape_cast %6 : vector<1x128x128xbf16> to vector<128x128xbf16>
    %c1_9 = arith.constant 1 : index
    %c0_10 = arith.constant 0 : index
    %c0_11 = arith.constant 0 : index
    %8 = vector.load %arg2[%c1_9, %c0_10, %c0_11] : memref<4x128x128xbf16, #tpu.memory_space<vmem>>, vector<1x128x128xbf16>
    %9 = vector.shape_cast %8 : vector<1x128x128xbf16> to vector<128x128xbf16>
    %cst_12 = arith.constant dense<0.000000e+00> : vector<128x128xf32>
    %10 = tpu.matmul %7, %9, %cst_12 {dimension_numbers = #tpu.dot_dimension_numbers<[1], [0], [0], [1], [0, 0, 1, 1], [], []>} : vector<128x128xbf16>, vector<128x128xbf16>, vector<128x128xf32> -> vector<128x128xf32>
    %11 = arith.addf %5, %10 : vector<128x128xf32>
    %c0_13 = arith.constant 0 : index
    %c16 = arith.constant 16 : index
    %c0_14 = arith.constant 0 : index
    %12 = vector.load %arg1[%c0_13, %c16, %c0_14] : memref<2x160x128xbf16, #tpu.memory_space<vmem>>, vector<1x128x128xbf16>
    %13 = vector.shape_cast %12 : vector<1x128x128xbf16> to vector<128x128xbf16>
    %c2 = arith.constant 2 : index
    %c0_15 = arith.constant 0 : index
    %c0_16 = arith.constant 0 : index
    %14 = vector.load %arg2[%c2, %c0_15, %c0_16] : memref<4x128x128xbf16, #tpu.memory_space<vmem>>, vector<1x128x128xbf16>
    %15 = vector.shape_cast %14 : vector<1x128x128xbf16> to vector<128x128xbf16>
    %cst_17 = arith.constant dense<0.000000e+00> : vector<128x128xf32>
    %16 = tpu.matmul %13, %15, %cst_17 {dimension_numbers = #tpu.dot_dimension_numbers<[1], [0], [0], [1], [0, 0, 1, 1], [], []>} : vector<128x128xbf16>, vector<128x128xbf16>, vector<128x128xf32> -> vector<128x128xf32>
    %17 = arith.addf %11, %16 : vector<128x128xf32>
    %c0_18 = arith.constant 0 : index
    %c17 = arith.constant 17 : index
    %c0_19 = arith.constant 0 : index
    %18 = vector.load %arg1[%c0_18, %c17, %c0_19] : memref<2x160x128xbf16, #tpu.memory_space<vmem>>, vector<1x128x128xbf16>
    %19 = vector.shape_cast %18 : vector<1x128x128xbf16> to vector<128x128xbf16>
    %c3 = arith.constant 3 : index
    %c0_20 = arith.constant 0 : index
    %c0_21 = arith.constant 0 : index
    %20 = vector.load %arg2[%c3, %c0_20, %c0_21] : memref<4x128x128xbf16, #tpu.memory_space<vmem>>, vector<1x128x128xbf16>
    %21 = vector.shape_cast %20 : vector<1x128x128xbf16> to vector<128x128xbf16>
    %cst_22 = arith.constant dense<0.000000e+00> : vector<128x128xf32>
    %22 = tpu.matmul %19, %21, %cst_22 {dimension_numbers = #tpu.dot_dimension_numbers<[1], [0], [0], [1], [0, 0, 1, 1], [], []>} : vector<128x128xbf16>, vector<128x128xbf16>, vector<128x128xf32> -> vector<128x128xf32>
    %23 = arith.addf %17, %22 : vector<128x128xf32>
    %24 = vector.broadcast %0 : vector<1x128xf32> to vector<128x128xf32>
    %25 = arith.addf %23, %24 : vector<128x128xf32>
    %cst_23 = arith.constant 0.000000e+00 : f32
    %26 = vector.broadcast %cst_23 : f32 to vector<128x128xf32>
    %27 = arith.maximumf %25, %26 : vector<128x128xf32>
    %28 = arith.truncf %27 : vector<128x128xf32> to vector<128x128xbf16>
    %c0_24 = arith.constant 0 : index
    %c0_25 = arith.constant 0 : index
    %c0_26 = arith.constant 0 : index
    %29 = vector.load %arg4[%c0_24, %c0_25, %c0_26] : memref<2x128x128xbf16, #tpu.memory_space<vmem>>, vector<1x128x128xbf16>
    %30 = vector.shape_cast %29 : vector<1x128x128xbf16> to vector<128x128xbf16>
    %31 = vector.shape_cast %28 : vector<128x128xbf16> to vector<1x128x128xbf16>
    tpu.vector_store %arg4[%c0_24, %c0_25, %c0_26], %31 {strides = array<i32>} : memref<2x128x128xbf16, #tpu.memory_space<vmem>>, vector<1x128x128xbf16>,
    %c1_27 = arith.constant 1 : index
    %c0_28 = arith.constant 0 : index
    %c0_29 = arith.constant 0 : index
    %32 = vector.load %arg1[%c1_27, %c0_28, %c0_29] : memref<2x160x128xbf16, #tpu.memory_space<vmem>>, vector<1x128x128xbf16>
    %33 = vector.shape_cast %32 : vector<1x128x128xbf16> to vector<128x128xbf16>
    %c0_30 = arith.constant 0 : index
    %c0_31 = arith.constant 0 : index
    %c0_32 = arith.constant 0 : index
    %34 = vector.load %arg2[%c0_30, %c0_31, %c0_32] : memref<4x128x128xbf16, #tpu.memory_space<vmem>>, vector<1x128x128xbf16>
    %35 = vector.shape_cast %34 : vector<1x128x128xbf16> to vector<128x128xbf16>
    %cst_33 = arith.constant dense<0.000000e+00> : vector<128x128xf32>
    %36 = tpu.matmul %33, %35, %cst_33 {dimension_numbers = #tpu.dot_dimension_numbers<[1], [0], [0], [1], [0, 0, 1, 1], [], []>} : vector<128x128xbf16>, vector<128x128xbf16>, vector<128x128xf32> -> vector<128x128xf32>
    %c1_34 = arith.constant 1 : index
    %c1_35 = arith.constant 1 : index
    %c0_36 = arith.constant 0 : index
    %37 = vector.load %arg1[%c1_34, %c1_35, %c0_36] : memref<2x160x128xbf16, #tpu.memory_space<vmem>>, vector<1x128x128xbf16>
    %38 = vector.shape_cast %37 : vector<1x128x128xbf16> to vector<128x128xbf16>
    %c1_37 = arith.constant 1 : index
    %c0_38 = arith.constant 0 : index
    %c0_39 = arith.constant 0 : index
    %39 = vector.load %arg2[%c1_37, %c0_38, %c0_39] : memref<4x128x128xbf16, #tpu.memory_space<vmem>>, vector<1x128x128xbf16>
    %40 = vector.shape_cast %39 : vector<1x128x128xbf16> to vector<128x128xbf16>
    %cst_40 = arith.constant dense<0.000000e+00> : vector<128x128xf32>
    %41 = tpu.matmul %38, %40, %cst_40 {dimension_numbers = #tpu.dot_dimension_numbers<[1], [0], [0], [1], [0, 0, 1, 1], [], []>} : vector<128x128xbf16>, vector<128x128xbf16>, vector<128x128xf32> -> vector<128x128xf32>
    %42 = arith.addf %36, %41 : vector<128x128xf32>
    %c1_41 = arith.constant 1 : index
    %c16_42 = arith.constant 16 : index
    %c0_43 = arith.constant 0 : index
    %43 = vector.load %arg1[%c1_41, %c16_42, %c0_43] : memref<2x160x128xbf16, #tpu.memory_space<vmem>>, vector<1x128x128xbf16>
    %44 = vector.shape_cast %43 : vector<1x128x128xbf16> to vector<128x128xbf16>
    %c2_44 = arith.constant 2 : index
    %c0_45 = arith.constant 0 : index
    %c0_46 = arith.constant 0 : index
    %45 = vector.load %arg2[%c2_44, %c0_45, %c0_46] : memref<4x128x128xbf16, #tpu.memory_space<vmem>>, vector<1x128x128xbf16>
    %46 = vector.shape_cast %45 : vector<1x128x128xbf16> to vector<128x128xbf16>
    %cst_47 = arith.constant dense<0.000000e+00> : vector<128x128xf32>
    %47 = tpu.matmul %44, %46, %cst_47 {dimension_numbers = #tpu.dot_dimension_numbers<[1], [0], [0], [1], [0, 0, 1, 1], [], []>} : vector<128x128xbf16>, vector<128x128xbf16>, vector<128x128xf32> -> vector<128x128xf32>
    %48 = arith.addf %42, %47 : vector<128x128xf32>
    %c1_48 = arith.constant 1 : index
    %c17_49 = arith.constant 17 : index
    %c0_50 = arith.constant 0 : index
    %49 = vector.load %arg1[%c1_48, %c17_49, %c0_50] : memref<2x160x128xbf16, #tpu.memory_space<vmem>>, vector<1x128x128xbf16>
    %50 = vector.shape_cast %49 : vector<1x128x128xbf16> to vector<128x128xbf16>
    %c3_51 = arith.constant 3 : index
    %c0_52 = arith.constant 0 : index
    %c0_53 = arith.constant 0 : index
    %51 = vector.load %arg2[%c3_51, %c0_52, %c0_53] : memref<4x128x128xbf16, #tpu.memory_space<vmem>>, vector<1x128x128xbf16>
    %52 = vector.shape_cast %51 : vector<1x128x128xbf16> to vector<128x128xbf16>
    %cst_54 = arith.constant dense<0.000000e+00> : vector<128x128xf32>
    %53 = tpu.matmul %50, %52, %cst_54 {dimension_numbers = #tpu.dot_dimension_numbers<[1], [0], [0], [1], [0, 0, 1, 1], [], []>} : vector<128x128xbf16>, vector<128x128xbf16>, vector<128x128xf32> -> vector<128x128xf32>
    %54 = arith.addf %48, %53 : vector<128x128xf32>
    %55 = vector.broadcast %0 : vector<1x128xf32> to vector<128x128xf32>
    %56 = arith.addf %54, %55 : vector<128x128xf32>
    %cst_55 = arith.constant 0.000000e+00 : f32
    %57 = vector.broadcast %cst_55 : f32 to vector<128x128xf32>
    %58 = arith.maximumf %56, %57 : vector<128x128xf32>
    %59 = arith.truncf %58 : vector<128x128xf32> to vector<128x128xbf16>
    %c1_56 = arith.constant 1 : index
    %c0_57 = arith.constant 0 : index
    %c0_58 = arith.constant 0 : index
    %60 = vector.load %arg4[%c1_56, %c0_57, %c0_58] : memref<2x128x128xbf16, #tpu.memory_space<vmem>>, vector<1x128x128xbf16>
    %61 = vector.shape_cast %60 : vector<1x128x128xbf16> to vector<128x128xbf16>
    %62 = vector.shape_cast %59 : vector<128x128xbf16> to vector<1x128x128xbf16>
    tpu.vector_store %arg4[%c1_56, %c0_57, %c0_58], %62 {strides = array<i32>} : memref<2x128x128xbf16, #tpu.memory_space<vmem>>, vector<1x128x128xbf16>,
    return
  }
  func.func @transform_0(%arg0: i32) -> (i32, i32, i32) {
    %c0_i32 = arith.constant 0 : i32
    %c0_i32_0 = arith.constant 0 : i32
    %c0_i32_1 = arith.constant 0 : i32
    return %arg0, %c0_i32, %c0_i32_0 : i32, i32, i32
  }
  func.func @transform_1(%arg0: i32) -> (i32, i32, i32) {
    %c0_i32 = arith.constant 0 : i32
    %c0_i32_0 = arith.constant 0 : i32
    %c0_i32_1 = arith.constant 0 : i32
    %c0_i32_2 = arith.constant 0 : i32
    return %c0_i32, %c0_i32_0, %c0_i32_1 : i32, i32, i32
  }
  func.func @transform_2(%arg0: i32) -> (i32, i32) {
    %c0_i32 = arith.constant 0 : i32
    %c0_i32_0 = arith.constant 0 : i32
    %c0_i32_1 = arith.constant 0 : i32
    return %c0_i32, %c0_i32_0 : i32, i32
  }
  func.func @transform_3(%arg0: i32) -> (i32, i32, i32) {
    %c0_i32 = arith.constant 0 : i32
    %c0_i32_0 = arith.constant 0 : i32
    %c0_i32_1 = arith.constant 0 : i32
    return %arg0, %c0_i32, %c0_i32_0 : i32, i32, i32
  }
}

</mosaic_0001>

<bundles_post_ra>
// kernel: conv_block_forward.1
= control target key start
LH: loop header
LB: loop body
LE: loop exit
PB: predicated region body
PF: predicated region fallthrough
CT: control target
= control target key end

     0   :  { %vm109_vm0 = vsmask.f32 7424  ;;  %s3899_s1 = inlined_call_operand.vmem [shape: bf16[4,128,128], index: 1, kind: input, shape index: {}]   ;;  %s3900_s0 = inlined_call_operand.vmem [shape: bf16[2,160,128], index: 0, kind: input, shape index: {}]   ;;  %s3901_s2 = inlined_call_operand.vmem [shape: f32[1,128], index: 2, kind: input, shape index: {}]   ;;  %s3902_s3 = inlined_call_operand.vmem [shape: bf16[2,128,128], index: 3, kind: output, shape index: {}]  }
   0x1   :  { %v3214_v0 = vld [vmem:[%s3899_s1 + $0x40] sm:$0xff]   ;;  %v3216_v2 = vld [vmem:[%s3899_s1 + $0x48] sm:$0xff]   ;;  %v3218_v4 = vld [vmem:[%s3899_s1 + $0x50] sm:$0xff]  }
   0x2   :  { %v3215_v1 = vld [vmem:[%s3899_s1 + $0x40] sm:$0xff]   ;;  %2862 = vmatprep.subr.bf16.mxu0 %v3214_v0  ;;  %v3217_v3 = vld [vmem:[%s3899_s1 + $0x48] sm:$0xff]   ;;  %v3219_v5 = vld [vmem:[%s3899_s1 + $0x50] sm:$0xff]  }
   0x3   :  { %2990 = vmatprep.subr.bf16.mxu1 %v3215_v1  ;;  %2863 = vmatpush3.bf16.msra.mxu0 %v3214_v0  ;;  %v3220_v6 = vld [vmem:[%s3899_s1 + $0x58] sm:$0xff]   ;;  %v3222_v8 = vld [vmem:[%s3899_s1 + $0x60] sm:$0xff]   ;;  %v3224_v10 = vld [vmem:[%s3899_s1 + $0x68] sm:$0xff]  }
   0x4   :  { %2991 = vmatpush3.bf16.msra.mxu1 %v3215_v1  ;;  %2864 = vmatprep.subr.bf16.mxu0 %v3216_v2  ;;  %v3221_v7 = vld [vmem:[%s3899_s1 + $0x58] sm:$0xff]   ;;  %v3223_v9 = vld [vmem:[%s3899_s1 + $0x60] sm:$0xff]   ;;  %v3225_v11 = vld [vmem:[%s3899_s1 + $0x68] sm:$0xff]  }
   0x5   :  { %2992 = vmatprep.subr.bf16.mxu1 %v3217_v3  ;;  %v3389_v12 = vld [vmem:[%s3900_s0] sm:$0xff]   ;;  %v3394_v13 = vld [vmem:[%s3900_s0 + $0x8] sm:$0xff]   ;;  %v3226_v14 = vld [vmem:[%s3899_s1 + $0x70] sm:$0xff]  }
   0x6   :  { %v111_v15 = vshrl.u32 %v3389_v12, 16  ;;  %v113_v16 = vshll.u32 %v3389_v12, 16  ;;  %v118_v17 = vshll.u32 %v3394_v13, 16  ;;  %v3405_v18 = vld [vmem:[%s3900_s0 + $0x50] sm:$0xff]   ;;  %v3410_v19 = vld [vmem:[%s3900_s0 + $0x58] sm:$0xff]   ;;  %v122_v20 = vshrl.u32 %v3394_v13, 16 }
   0x7   :  { %2865 = vmatpush3.bf16.msra.mxu0 %v3216_v2  ;;  %v3227_v21 = vld [vmem:[%s3899_s1 + $0x70] sm:$0xff]   ;;  %v1252_v24 = vshrl.u32 %v3405_v18, 16  ;;  %v1254_v25 = vshll.u32 %v3405_v18, 16  ;;  %v1259_v27 = vshll.u32 %v3410_v19, 16  ;;  %v3427_v28 = vld [vmem:[%s3900_s0 + $0x60] sm:$0xff]   ;;  %v3228_v32 = vld [vmem:[%s3899_s1 + $0x78] sm:$0xff]  }
   0x8   :  { %2993 = vmatpush3.bf16.msra.mxu1 %v3217_v3  ;;  %2866 = vmatprep.subr.bf16.mxu0 %v3218_v4  ;;  %v115_v22 = vrot.slane %v113_v16, 1  ;;  %v120_v23 = vrot.slane %v118_v17, 1  ;;  %v3421_v26 = vld [vmem:[%s3900_s0 + $0x10] sm:$0xff]   ;;  %v1263_v34 = vshrl.u32 %v3410_v19, 16  ;;  %v1267_v35 = vshll.u32 %v3427_v28, 16  ;;  %v3229_v36 = vld [vmem:[%s3899_s1 + $0x78] sm:$0xff]  }
   0x9   :  { %2994 = vmatprep.subr.bf16.mxu1 %v3219_v5  ;;  %v1256_v30 = vrot.slane %v1254_v25, 1  ;;  %v126_v31 = vshll.u32 %v3421_v26, 16  ;;  %v1261_v33 = vrot.slane %v1259_v27, 1  ;;  %v3235_v40 = vld [vmem:[%s3899_s1] sm:$0xff]   ;;  %v3449_v46 = vld [vmem:[%s3900_s0 + $0x18] sm:$0xff]   ;;  %v130_v47 = vshrl.u32 %v3421_v26, 16 }
   0xa   :  { %v116_v29 = vor.u32 %v115_v22, %v111_v15  ;;  %v1269_v41 = vrot.slane %v1267_v35, 1  ;;  %v124_v43 = vor.u32 %v122_v20, %v120_v23  ;;  %v3237_v44 = vld [vmem:[%s3899_s1] sm:$0xff]   ;;  %v3455_v48 = vld [vmem:[%s3900_s0 + $0x68] sm:$0xff]   ;;  %v1271_v49 = vshrl.u32 %v3427_v28, 16  ;;  %v3473_v58 = vld [vmem:[%s3900_s0 + $0x70] sm:$0xff]  }
   0xb   :  { %2867 = vmatpush3.bf16.msra.mxu0 %v3218_v4  ;;  %v1257_v38 = vor.u32 %v1256_v30, %v1252_v24  ;;  %v128_v39 = vrot.slane %v126_v31, 1  ;;  %v1265_v45 = vor.u32 %v1263_v34, %v1261_v33  ;;  %v3238_v50 = vld [vmem:[%s3899_s1 + $0x8] sm:$0xff]   ;;  %v134_v52 = vshll.u32 %v3449_v46, 16  ;;  %v3465_v53 = vld [vmem:[%s3900_s0 + $0x20] sm:$0xff]   ;;  %v3243_v3 = vld [vmem:[%s3899_s1 + $0x10] sm:$0xff]  }
   0xc   :  { %2995 = vmatpush3.bf16.msra.mxu1 %v3219_v5  ;;  %2868 = vmatprep.subr.bf16.mxu0 %v3220_v6  ;;  %v121_v37 = vsel %vm109_vm0, %v116_v29, %v120_v23  ;;  %v138_v54 = vshrl.u32 %v3449_v46, 16  ;;  %v1273_v56 = vor.u32 %v1271_v49, %v1269_v41  ;;  %v1275_v57 = vshll.u32 %v3455_v48, 16  ;;  %v3239_v60 = vld [vmem:[%s3899_s1 + $0x8] sm:$0xff]   ;;  %v3246_v16 = vld [vmem:[%s3899_s1 + $0x18] sm:$0xff]  }
   0xd   :  { %2996 = vmatprep.subr.bf16.mxu1 %v3221_v7  ;;  %2878 = vmatprep.mubr.bf16.mxu0 %v121_v37  ;;  %v1262_v42 = vsel %vm109_vm0, %v1257_v38, %v1261_v33  ;;  %v132_v51 = vor.u32 %v130_v47, %v128_v39  ;;  %v129_v55 = vsel %vm109_vm0, %v124_v43, %v128_v39  ;;  %v136_v61 = vrot.slane %v134_v52, 1  ;;  %v3247_v29 = vld [vmem:[%s3899_s1 + $0x18] sm:$0xff]   ;;  %v3251_v37 = vld [vmem:[%s3899_s1 + $0x20] sm:$0xff]   ;;  %v3254_v47 = vld [vmem:[%s3899_s1 + $0x28] sm:$0xff]  }
   0xe   :  { %3006 = vmatprep.mubr.bf16.mxu1 %v1262_v42  ;;  %v1270_v59 = vsel %vm109_vm0, %v1265_v45, %v1269_v41  ;;  %v142_v62 = vshll.u32 %v3465_v53, 16  ;;  %v1279_v63 = vshrl.u32 %v3455_v48, 16  ;;  %v1277_v0 = vrot.slane %v1275_v57, 1  ;;  %v3253_v43 = vld [vmem:[%s3899_s1 + $0x20] sm:$0xff]   ;;  %v3546_v49 = vld [vmem:[%s3900_s0 + $0x88] sm:$0xff]  }
   0xf   :  { %2869 = vmatpush3.bf16.msra.mxu0 %v3220_v6  ;;  %v1283_v1 = vshll.u32 %v3473_v58, 16  ;;  %v137_v2 = vsel %vm109_vm0, %v132_v51, %v136_v61  ;;  %v140_v5 = vor.u32 %v138_v54, %v136_v61  ;;  %v1287_v15 = vshrl.u32 %v3473_v58, 16  ;;  %v3255_v52 = vld [vmem:[%s3899_s1 + $0x28] sm:$0xff]  }
  0x10   :  { %2997 = vmatpush3.bf16.msra.mxu1 %v3221_v7  ;;  %2870 = vmatprep.subr.bf16.mxu0 %v3222_v8  ;;  %v1278_v4 = vsel %vm109_vm0, %v1273_v56, %v1277_v0  ;;  %v144_v6 = vrot.slane %v142_v62, 1  ;;  %v3258_v56 = vld [vmem:[%s3900_s0 + $0x40] ss:$0 sps:$4 sm:$0x11]   ;;  %v1307_v61 = vshll.u32 %v3546_v49, 16  ;;  %v1311_v62 = vshrl.u32 %v3546_v49, 16 }
  0x11   :  { %2998 = vmatprep.subr.bf16.mxu1 %v3223_v9  ;;  %v1285_v7 = vrot.slane %v1283_v1, 1 }
  0x12   :  { %v145_v22 = vsel %vm109_vm0, %v140_v5, %v144_v6  ;;  %v1309_v1 = vrot.slane %v1307_v61, 1  ;;  %v3303_v61 = vld [vmem:[%s3899_s1 + $0xe8] sm:$0xff]  }
  0x13   :  { %2871 = vmatpush3.bf16.msra.mxu0 %v3222_v8  ;;  %v3245_v8 = vld [vmem:[%s3899_s1 + $0x10] sm:$0xff]   ;;  %v1289_v23 = vor.u32 %v1287_v15, %v1285_v7 }
  0x14   :  { %2999 = vmatpush3.bf16.msra.mxu1 %v3223_v9  ;;  %2872 = vmatprep.subr.bf16.mxu0 %v3224_v10  ;;  %v1281_v9 = vor.u32 %v1279_v63, %v1277_v0  ;;  %v174_v0 = vshll.u32 %v3258_v56, 16  ;;  %v3302_v56 = vld [vmem:[%s3899_s1 + $0xe8] sm:$0xff]  }
  0x15   :  { %3000 = vmatprep.subr.bf16.mxu1 %v3225_v11 }
  0x16   :  { %v1286_v27 = vsel %vm109_vm0, %v1281_v9, %v1285_v7  ;;  %v176_v5 = vrot.slane %v174_v0, 1  ;;  %v3259_v7 = vld [vmem:[%s3899_s1 + $0x30] sm:$0xff]  }
  0x17   :  { %2873 = vmatpush3.bf16.msra.mxu0 %v3224_v10  ;;  %v3493_v10 = vld [vmem:[%s3900_s0 + $0x28] sm:$0xff]  }
  0x18   :  { %3001 = vmatpush3.bf16.msra.mxu1 %v3225_v11  ;;  %2874 = vmatprep.subr.bf16.mxu0 %v3226_v14  ;;  %v146_v11 = vshrl.u32 %v3465_v53, 16  ;;  %v150_v20 = vshll.u32 %v3493_v10, 16  ;;  %v154_v25 = vshrl.u32 %v3493_v10, 16 }
  0x19   :  { %3002 = vmatprep.subr.bf16.mxu1 %v3227_v21 }
  0x1a   :  { %v148_v17 = vor.u32 %v146_v11, %v144_v6  ;;  %v152_v30 = vrot.slane %v150_v20, 1  ;;  %v3261_v11 = vld [vmem:[%s3899_s1 + $0x30] sm:$0xff]   ;;  %v3262_v20 = vld [vmem:[%s3899_s1 + $0x38] sm:$0xff]  }
  0x1b   :  { %2875 = vmatpush3.bf16.msra.mxu0 %v3226_v14  ;;  %v3499_v14 = vld [vmem:[%s3900_s0 + $0x78] sm:$0xff]  }
  0x1c   :  { %3003 = vmatpush3.bf16.msra.mxu1 %v3227_v21  ;;  %2876 = vmatprep.subr.bf16.mxu0 %v3228_v32  ;;  %v3509_v21 = vld [vmem:[%s3900_s0 + $0x30] sm:$0xff]   ;;  %v1291_v24 = vshll.u32 %v3499_v14, 16  ;;  %v1295_v34 = vshrl.u32 %v3499_v14, 16  ;;  %v153_v35 = vsel %vm109_vm0, %v148_v17, %v152_v30 }
  0x1d   :  { %3004 = vmatprep.subr.bf16.mxu1 %v3229_v36  ;;  %v158_v31 = vshll.u32 %v3509_v21, 16  ;;  %v162_v45 = vshrl.u32 %v3509_v21, 16 }
  0x1e   :  { %v1293_v33 = vrot.slane %v1291_v24, 1  ;;  %v3265_v24 = vld [vmem:[%s3899_s1 + $0x80] sm:$0xff]  }
  0x1f   :  { %2877 = vmatpush3.bf16.msra.mxu0 %v3228_v32  ;;  %v3522_v32 = vld [vmem:[%s3900_s0 + $0x80] sm:$0xff]  }
  0x20   :  { %3005 = vmatpush3.bf16.msra.mxu1 %v3229_v36  ;;  %2894 = vmatprep.subr.bf16.mxu0 %v3235_v40  ;;  %v160_v36 = vrot.slane %v158_v31, 1  ;;  %v1299_v38 = vshll.u32 %v3522_v32, 16  ;;  %v1294_v39 = vsel %vm109_vm0, %v1289_v23, %v1293_v33  ;;  %v1297_v41 = vor.u32 %v1295_v34, %v1293_v33  ;;  %v3264_v23 = vld [vmem:[%s3899_s1 + $0x80] sm:$0xff]   ;;  %v3286_v34 = vld [vmem:[%s3899_s1 + $0xc8] sm:$0xff]  }
  0x21   :  { %3022 = vmatprep.subr.bf16.mxu1 %v3237_v44  ;;  %v3283_v31 = vld [vmem:[%s3899_s1 + $0xc0] sm:$0xff]  }
  0x22   :  { %2879 = vmatmul.mubr.bf16.vlgmr.msra.gmra.mrb[0].mxu0 %v129_v55  ;;  %v1301_v42 = vrot.slane %v1299_v38, 1  ;;  %v164_v54 = vor.u32 %v162_v45, %v160_v36  ;;  %v3284_v33 = vld [vmem:[%s3900_s0 + $0x60] sm:$0xff]   ;;  %v3297_v45 = vld [vmem:[%s3900_s0 + $0x78] sm:$0xff]  }
  0x23   :  { %3007 = vmatmul.mubr.bf16.vlgmr.msra.gmra.mrb[0].mxu1 %v1270_v59  ;;  %2895 = vmatpush3.bf16.msra.mxu0 %v3235_v40  ;;  %v156_v40 = vor.u32 %v154_v25, %v152_v30  ;;  %v3266_v25 = vld [vmem:[%s3899_s1 + $0x88] sm:$0xff]   ;;  %v3282_v30 = vld [vmem:[%s3900_s0 + $0x10] sm:$0xff]   ;;  %v3290_v38 = vld [vmem:[%s3900_s0 + $0x20] sm:$0xff]  }
  0x24   :  { %3023 = vmatpush3.bf16.msra.mxu1 %v3237_v44  ;;  %2896 = vmatprep.subr.bf16.mxu0 %v3238_v50  ;;  %v3537_v44 = vld [vmem:[%s3900_s0 + $0x38] sm:$0xff]   ;;  %v1302_v59 = vsel %vm109_vm0, %v1297_v41, %v1301_v42  ;;  %v3292_v41 = vld [vmem:[%s3900_s0 + $0x70] sm:$0xff]  }
  0x25   :  { %3024 = vmatprep.subr.bf16.mxu1 %v3239_v60  ;;  %2882 = vmatprep.mubr.bf16.mxu0 %v137_v2  ;;  %v161_v51 = vsel %vm109_vm0, %v156_v40, %v160_v36  ;;  %v166_v55 = vshll.u32 %v3537_v44, 16  ;;  %v170_v57 = vshrl.u32 %v3537_v44, 16  ;;  %v3260_v2 = vld [vmem:[%s3900_s0 + $0x90] ss:$0 sps:$4 sm:$0x11]   ;;  %v3288_v36 = vld [vmem:[%s3900_s0 + $0x18] sm:$0xff]  }
  0x26   :  { %3010 = vmatprep.mubr.bf16.mxu1 %v1278_v4  ;;  %v1315_v9 = vshll.u32 %v3260_v2, 16  ;;  %v3293_v40 = vld [vmem:[%s3899_s1 + $0xd0] sm:$0xff]  }
  0x27   :  { %2897 = vmatpush3.bf16.msra.mxu0 %v3238_v50  ;;  %v1303_v50 = vshrl.u32 %v3522_v32, 16  ;;  %v168_v63 = vrot.slane %v166_v55, 1  ;;  %v3300_v55 = vld [vmem:[%s3900_s0 + $0x80] sm:$0xff]   ;;  %v3307_v2 = vld [vmem:[%s3899_s1 + $0xf0] sm:$0xff]  }
  0x28   :  { %3025 = vmatpush3.bf16.msra.mxu1 %v3239_v60  ;;  %2898 = vmatprep.subr.bf16.mxu0 %v3243_v3  ;;  %v1317_v15 = vrot.slane %v1315_v9, 1  ;;  %v3306_v9 = vld [vmem:[%s3900_s0 + $0x40] sm:$0xff]  }
  0x29   :  { %3026 = vmatprep.subr.bf16.mxu1 %v3245_v8  ;;  %v1305_v60 = vor.u32 %v1303_v50, %v1301_v42  ;;  %v172_v4 = vor.u32 %v170_v57, %v168_v63  ;;  %v3294_v42 = vld [vmem:[%s3899_s1 + $0xd8] sm:$0xff]   ;;  %v3298_v50 = vld [vmem:[%s3900_s0 + $0x30] sm:$0xff]  }
  0x2a   :  { %2883 = vmatmul.mubr.bf16.gmra.mrb[4].mxu0 %v145_v22  ;;  %v3263_v22 = vld [vmem:[%s3899_s1 + $0x38] sm:$0xff]  }
  0x2b   :  { %3011 = vmatmul.mubr.bf16.gmra.mrb[4].mxu1 %v1286_v27  ;;  %2899 = vmatpush3.bf16.msra.mxu0 %v3243_v3  ;;  %v169_v3 = vsel %vm109_vm0, %v164_v54, %v168_v63  ;;  %v1310_v6 = vsel %vm109_vm0, %v1305_v60, %v1309_v1  ;;  %v3267_v27 = vld [vmem:[%s3899_s1 + $0x88] sm:$0xff]   ;;  %v3313_v54 = vld [vmem:[%s3900_s0 + $0x10] sm:$0xff]  }
  0x2c   :  { %3027 = vmatpush3.bf16.msra.mxu1 %v3245_v8  ;;  %2900 = vmatprep.subr.bf16.mxu0 %v3246_v16  ;;  %v1313_v8 = vor.u32 %v1311_v62, %v1309_v1  ;;  %v3304_v62 = vld [vmem:[%s3900_s0 + $0x38] sm:$0xff]   ;;  %v3305_v63 = vld [vmem:[%s3900_s0 + $0x88] sm:$0xff]   ;;  %v811_v1 = vshll.u32 %v3313_v54, 16 }
  0x2d   :  { %3028 = vmatprep.subr.bf16.mxu1 %v3247_v29  ;;  %2886 = vmatprep.mubr.bf16.mxu0 %v153_v35  ;;  %v3287_v35 = vld [vmem:[%s3899_s1 + $0xc8] sm:$0xff]  }
  0x2e   :  { %3014 = vmatprep.mubr.bf16.mxu1 %v1294_v39  ;;  %v1318_v17 = vsel %vm109_vm0, %v1313_v8, %v1317_v15  ;;  %v3291_v39 = vld [vmem:[%s3899_s1 + $0xd0] sm:$0xff]   ;;  %v3317_v8 = vld [vmem:[%s3900_s0 + $0x68] sm:$0xff]  }
  0x2f   :  { %2901 = vmatpush3.bf16.msra.mxu0 %v3246_v16  ;;  %v177_v16 = vsel %vm109_vm0, %v172_v4, %v176_v5  ;;  %v3316_v4 = vld [vmem:[%s3900_s0 + $0x18] sm:$0xff]   ;;  %v3308_v15 = vld [vmem:[%s3900_s0 + $0x90] sm:$0xff]  }
  0x30   :  { %3029 = vmatpush3.bf16.msra.mxu1 %v3247_v29  ;;  %2902 = vmatprep.subr.bf16.mxu0 %v3251_v37  ;;  %v3281_v29 = vld [vmem:[%s3900_s0 + $0x58] sm:$0xff]  }
  0x31   :  { %3030 = vmatprep.subr.bf16.mxu1 %v3253_v43 }
  0x32   :  { %2887 = vmatmul.mubr.bf16.gmra.mrb[8].mxu0 %v161_v51  ;;  %v3299_v51 = vld [vmem:[%s3899_s1 + $0xe0] sm:$0xff]  }
  0x33   :  { %3015 = vmatmul.mubr.bf16.gmra.mrb[8].mxu1 %v1302_v59  ;;  %2903 = vmatpush3.bf16.msra.mxu0 %v3251_v37  ;;  %v3289_v37 = vld [vmem:[%s3900_s0 + $0x68] sm:$0xff]   ;;  %v3315_v59 = vld [vmem:[%s3900_s0 + $0x60] sm:$0xff]  }
  0x34   :  { %3031 = vmatpush3.bf16.msra.mxu1 %v3253_v43  ;;  %2904 = vmatprep.subr.bf16.mxu0 %v3254_v47  ;;  %v3295_v43 = vld [vmem:[%s3899_s1 + $0xd8] sm:$0xff]  }
  0x35   :  { %3032 = vmatprep.subr.bf16.mxu1 %v3255_v52  ;;  %2890 = vmatprep.mubr.bf16.mxu0 %v169_v3 }
  0x36   :  { %3018 = vmatprep.mubr.bf16.mxu1 %v1310_v6 }
  0x37   :  { %2905 = vmatpush3.bf16.msra.mxu0 %v3254_v47  ;;  %v3312_v47 = vld [vmem:[%s3900_s0 + $0x8] sm:$0xff]  }
  0x38   :  { %3033 = vmatpush3.bf16.msra.mxu1 %v3255_v52  ;;  %2906 = vmatprep.subr.bf16.mxu0 %v3259_v7  ;;  %v3301_v52 = vld [vmem:[%s3899_s1 + $0xe0] sm:$0xff]   ;;  %v806_v57 = vshll.u32 %v3312_v47, 16  ;;  %v804_v0 = vshrl.u32 %v3312_v47, 16 }
  0x39   :  { %3034 = vmatprep.subr.bf16.mxu1 %v3261_v11 }
  0x3a   :  { %2891 = vmatmul.mubr.bf16.gmra.mrb[12].mxu0 %v177_v16  ;;  %v808_v3 = vrot.slane %v806_v57, 1  ;;  %v3309_v16 = vld [vmem:[%s3899_s1 + $0xf0] sm:$0xff]  }
  0x3b   :  { %3019 = vmatmul.mubr.bf16.gmra.mrb[12].mxu1 %v1318_v17  ;;  %2907 = vmatpush3.bf16.msra.mxu0 %v3259_v7  ;;  %v1950_v7 = vshll.u32 %v3315_v59, 16  ;;  %v815_v17 = vshrl.u32 %v3313_v54, 16  ;;  %v3324_v54 = vld [vmem:[%s3900_s0 + $0x38] sm:$0xff]  }
  0x3c   :  { %3035 = vmatpush3.bf16.msra.mxu1 %v3261_v11  ;;  %2908 = vmatprep.subr.bf16.mxu0 %v3262_v20  ;;  %v3749_v11 = vld [vmem:[%s3900_s0 + $0x20] sm:$0xff]  }
  0x3d   :  { %3036 = vmatprep.subr.bf16.mxu1 %v3263_v22  ;;  %2910 = vmatprep.mubr.bf16.mxu0 %v3389_v12  ;;  %v3268_v12 = vld [vmem:[%s3899_s1 + $0x90] sm:$0xff]  }
  0x3e   :  { %3038 = vmatprep.mubr.bf16.mxu1 %v3405_v18  ;;  %v3269_v18 = vld [vmem:[%s3899_s1 + $0x90] sm:$0xff]  }
  0x3f   :  { %2909 = vmatpush3.bf16.msra.mxu0 %v3262_v20  ;;  %v3319_v20 = vld [vmem:[%s3900_s0 + $0x70] sm:$0xff]  }
  0x40   :  { %3037 = vmatpush3.bf16.msra.mxu1 %v3263_v22  ;;  %2926 = vmatprep.subr.bf16.mxu0 %v3264_v23  ;;  %v809_v22 = vor.u32 %v808_v3, %v804_v0 }
  0x41   :  { %3054 = vmatprep.subr.bf16.mxu1 %v3265_v24 }
  0x42   :  { %2911 = vmatmul.mubr.bf16.vlgmr.msra.gmra.mrb[0].mxu0 %v3394_v13  ;;  %v3270_v13 = vld [vmem:[%s3899_s1 + $0x98] sm:$0xff]  }
  0x43   :  { %3039 = vmatmul.mubr.bf16.vlgmr.msra.gmra.mrb[0].mxu1 %v3410_v19  ;;  %2927 = vmatpush3.bf16.msra.mxu0 %v3264_v23  ;;  %v3271_v19 = vld [vmem:[%s3899_s1 + $0x98] sm:$0xff]   ;;  %v813_v23 = vrot.slane %v811_v1, 1  ;;  %v3327_v1 = vld [vmem:[%s3900_s0 + $0x90] sm:$0xff]  }
  0x44   :  { %3055 = vmatpush3.bf16.msra.mxu1 %v3265_v24  ;;  %2928 = vmatprep.subr.bf16.mxu0 %v3266_v25  ;;  %v819_v24 = vshll.u32 %v3316_v4, 16 }
  0x45   :  { %3056 = vmatprep.subr.bf16.mxu1 %v3267_v27  ;;  %2914 = vmatprep.mubr.bf16.mxu0 %v3421_v26  ;;  %v3272_v26 = vld [vmem:[%s3899_s1 + $0xa0] sm:$0xff]  }
  0x46   :  { %3042 = vmatprep.mubr.bf16.mxu1 %v3427_v28  ;;  %v3273_v28 = vld [vmem:[%s3899_s1 + $0xa0] sm:$0xff]  }
  0x47   :  { %2929 = vmatpush3.bf16.msra.mxu0 %v3266_v25 }
  0x48   :  { %3057 = vmatpush3.bf16.msra.mxu1 %v3267_v27  ;;  %2930 = vmatprep.subr.bf16.mxu0 %v3268_v12  ;;  %v1952_v27 = vrot.slane %v1950_v7, 1 }
  0x49   :  { %3058 = vmatprep.subr.bf16.mxu1 %v3269_v18 }
  0x4a   :  { %2915 = vmatmul.mubr.bf16.gmra.mrb[4].mxu0 %v3449_v46  ;;  %v3274_v46 = vld [vmem:[%s3899_s1 + $0xa8] sm:$0xff]  }
  0x4b   :  { %3043 = vmatmul.mubr.bf16.gmra.mrb[4].mxu1 %v3455_v48  ;;  %2931 = vmatpush3.bf16.msra.mxu0 %v3268_v12  ;;  %v3275_v48 = vld [vmem:[%s3899_s1 + $0xa8] sm:$0xff]   ;;  %v1958_v12 = vshll.u32 %v3317_v8, 16 }
  0x4c   :  { %3059 = vmatpush3.bf16.msra.mxu1 %v3269_v18  ;;  %2932 = vmatprep.subr.bf16.mxu0 %v3270_v13  ;;  %v3310_v18 = vld [vmem:[%s3899_s1 + $0xf8] sm:$0xff]  }
  0x4d   :  { %3060 = vmatprep.subr.bf16.mxu1 %v3271_v19  ;;  %2918 = vmatprep.mubr.bf16.mxu0 %v3465_v53  ;;  %v3276_v53 = vld [vmem:[%s3899_s1 + $0xb0] sm:$0xff]  }
  0x4e   :  { %3046 = vmatprep.mubr.bf16.mxu1 %v3473_v58  ;;  %v3277_v58 = vld [vmem:[%s3899_s1 + $0xb0] sm:$0xff]  }
  0x4f   :  { %2933 = vmatpush3.bf16.msra.mxu0 %v3270_v13  ;;  %v1954_v13 = vshrl.u32 %v3315_v59, 16  ;;  %v3325_v59 = vld [vmem:[%s3900_s0 + $0x88] sm:$0xff]  }
  0x50   :  { %3061 = vmatpush3.bf16.msra.mxu1 %v3271_v19  ;;  %2934 = vmatprep.subr.bf16.mxu0 %v3272_v26  ;;  %v823_v19 = vshrl.u32 %v3316_v4, 16 }
  0x51   :  { %3062 = vmatprep.subr.bf16.mxu1 %v3273_v28 }
  0x52   :  { %2919 = vmatmul.mubr.bf16.gmra.mrb[8].mxu0 %v3493_v10  ;;  %v3278_v10 = vld [vmem:[%s3899_s1 + $0xb8] sm:$0xff]  }
  0x53   :  { %3047 = vmatmul.mubr.bf16.gmra.mrb[8].mxu1 %v3499_v14  ;;  %2935 = vmatpush3.bf16.msra.mxu0 %v3272_v26  ;;  %v3279_v14 = vld [vmem:[%s3899_s1 + $0xb8] sm:$0xff]   ;;  %v827_v26 = vshll.u32 %v3749_v11, 16 }
  0x54   :  { %3063 = vmatpush3.bf16.msra.mxu1 %v3273_v28  ;;  %2936 = vmatprep.subr.bf16.mxu0 %v3274_v46  ;;  %v3311_v28 = vld [vmem:[%s3899_s1 + $0xf8] sm:$0xff]  }
  0x55   :  { %3064 = vmatprep.subr.bf16.mxu1 %v3275_v48  ;;  %2922 = vmatprep.mubr.bf16.mxu0 %v3509_v21  ;;  %v3280_v21 = vld [vmem:[%s3900_s0 + $0x8] sm:$0xff]  }
  0x56   :  { %3050 = vmatprep.mubr.bf16.mxu1 %v3522_v32  ;;  %v3285_v32 = vld [vmem:[%s3899_s1 + $0xc0] sm:$0xff]  }
  0x57   :  { %2937 = vmatpush3.bf16.msra.mxu0 %v3274_v46  ;;  %v1962_v46 = vshrl.u32 %v3317_v8, 16 }
  0x58   :  { %3065 = vmatpush3.bf16.msra.mxu1 %v3275_v48  ;;  %2938 = vmatprep.subr.bf16.mxu0 %v3276_v53  ;;  %v1966_v48 = vshll.u32 %v3319_v20, 16 }
  0x59   :  { %3066 = vmatprep.subr.bf16.mxu1 %v3277_v58 }
  0x5a   :  { %2923 = vmatmul.mubr.bf16.gmra.mrb[12].mxu0 %v3537_v44  ;;  %v3296_v44 = vld [vmem:[%s3900_s0 + $0x28] sm:$0xff]  }
  0x5b   :  { %3051 = vmatmul.mubr.bf16.gmra.mrb[12].mxu1 %v3546_v49  ;;  %2939 = vmatpush3.bf16.msra.mxu0 %v3276_v53  ;;  %v3314_v49 = vld [vmem:[%s3900_s0 + $0x58] sm:$0xff]   ;;  %v814_v53 = vsel %vm109_vm0, %v809_v22, %v813_v23 }
  0x5c   :  { %3067 = vmatpush3.bf16.msra.mxu1 %v3277_v58  ;;  %2940 = vmatprep.subr.bf16.mxu0 %v3278_v10  ;;  %v1945_v60 = vshll.u32 %v3314_v49, 16  ;;  %v1943_v5 = vshrl.u32 %v3314_v49, 16  ;;  %v821_v58 = vrot.slane %v819_v24, 1  ;;  %v3328_v24 = vld [vmem:[%s3900_s0 + $0x48] ss:$0 sps:$4 sm:$0x11]  }
  0x5d   :  { %3068 = vmatprep.subr.bf16.mxu1 %v3279_v14  ;;  %2942 = vmatprep.mubr.bf16.mxu0 %v3280_v21 }
  0x5e   :  { %3070 = vmatprep.mubr.bf16.mxu1 %v3281_v29  ;;  %v1947_v6 = vrot.slane %v1945_v60, 1  ;;  %v1960_v29 = vrot.slane %v1958_v12, 1 }
  0x5f   :  { %2941 = vmatpush3.bf16.msra.mxu0 %v3278_v10  ;;  %v3320_v10 = vld [vmem:[%s3900_s0 + $0x28] sm:$0xff]  }
  0x60   :  { %3069 = vmatpush3.bf16.msra.mxu1 %v3279_v14  ;;  %2958 = vmatprep.subr.bf16.mxu0 %v3283_v31  ;;  %v1948_v25 = vor.u32 %v1947_v6, %v1943_v5  ;;  %v817_v14 = vor.u32 %v815_v17, %v813_v23  ;;  %v1990_v6 = vshll.u32 %v3325_v59, 16  ;;  %v1998_v17 = vshll.u32 %v3327_v1, 16 }
  0x61   :  { %3086 = vmatprep.subr.bf16.mxu1 %v3285_v32 }
  0x62   :  { %2943 = vmatmul.mubr.bf16.vlgmr.msra.gmra.mrb[0].mxu0 %v3282_v30  ;;  %v1953_v21 = vsel %vm109_vm0, %v1948_v25, %v1952_v27  ;;  %v3321_v30 = vld [vmem:[%s3900_s0 + $0x78] sm:$0xff]   ;;  %v1992_v23 = vrot.slane %v1990_v6, 1 }
  0x63   :  { %3071 = vmatmul.mubr.bf16.vlgmr.msra.gmra.mrb[0].mxu1 %v3284_v33  ;;  %2959 = vmatpush3.bf16.msra.mxu0 %v3283_v31  ;;  %v1956_v31 = vor.u32 %v1954_v13, %v1952_v27  ;;  %v829_v33 = vrot.slane %v827_v26, 1 }
  0x64   :  { %3087 = vmatpush3.bf16.msra.mxu1 %v3285_v32  ;;  %2960 = vmatprep.subr.bf16.mxu0 %v3286_v34  ;;  %v825_v32 = vor.u32 %v823_v19, %v821_v58  ;;  %v2000_v19 = vrot.slane %v1998_v17, 1 }
  0x65   :  { %3088 = vmatprep.subr.bf16.mxu1 %v3287_v35  ;;  %2946 = vmatprep.mubr.bf16.mxu0 %v3288_v36  ;;  %v1968_v36 = vrot.slane %v1966_v48, 1 }
  0x66   :  { %3074 = vmatprep.mubr.bf16.mxu1 %v3289_v37  ;;  %v3323_v37 = vld [vmem:[%s3900_s0 + $0x80] sm:$0xff]  }
  0x67   :  { %2961 = vmatpush3.bf16.msra.mxu0 %v3286_v34  ;;  %v3322_v34 = vld [vmem:[%s3900_s0 + $0x30] sm:$0xff]   ;;  %v1986_v8 = vshrl.u32 %v3323_v37, 16 }
  0x68   :  { %3089 = vmatpush3.bf16.msra.mxu1 %v3287_v35  ;;  %2962 = vmatprep.subr.bf16.mxu0 %v3291_v39  ;;  %v1964_v35 = vor.u32 %v1962_v46, %v1960_v29  ;;  %v843_v47 = vshll.u32 %v3322_v34, 16  ;;  %v847_v5 = vshrl.u32 %v3322_v34, 16  ;;  %v867_v46 = vshll.u32 %v3328_v24, 16  ;;  %v3817_v34 = vld [vmem:[%s3901_s2] ss:$0 sm:$0xff] }
  0x69   :  { %3090 = vmatprep.subr.bf16.mxu1 %v3293_v40 }
  0x6a   :  { %2947 = vmatmul.mubr.bf16.gmra.mrb[4].mxu0 %v3290_v38  ;;  %v835_v38 = vshll.u32 %v3320_v10, 16  ;;  %v1969_v49 = vsel %vm109_vm0, %v1964_v35, %v1968_v36 }
  0x6b   :  { %3075 = vmatmul.mubr.bf16.gmra.mrb[4].mxu1 %v3292_v41  ;;  %2963 = vmatpush3.bf16.msra.mxu0 %v3291_v39  ;;  %v822_v39 = vsel %vm109_vm0, %v817_v14, %v821_v58  ;;  %v1970_v41 = vshrl.u32 %v3319_v20, 16  ;;  %v2002_v58 = vshrl.u32 %v3327_v1, 16 }
  0x6c   :  { %3091 = vmatpush3.bf16.msra.mxu1 %v3293_v40  ;;  %2964 = vmatprep.subr.bf16.mxu0 %v3294_v42  ;;  %v831_v40 = vshrl.u32 %v3749_v11, 16 }
  0x6d   :  { %3092 = vmatprep.subr.bf16.mxu1 %v3295_v43  ;;  %2950 = vmatprep.mubr.bf16.mxu0 %v3296_v44  ;;  %v830_v44 = vsel %vm109_vm0, %v825_v32, %v829_v33 }
  0x6e   :  { %3078 = vmatprep.mubr.bf16.mxu1 %v3297_v45  ;;  %v839_v45 = vshrl.u32 %v3320_v10, 16 }
  0x6f   :  { %2965 = vmatpush3.bf16.msra.mxu0 %v3294_v42  ;;  %v1974_v42 = vshll.u32 %v3321_v30, 16 }
  0x70   :  { %3093 = vmatpush3.bf16.msra.mxu1 %v3295_v43  ;;  %2966 = vmatprep.subr.bf16.mxu0 %v3299_v51  ;;  %v1961_v43 = vsel %vm109_vm0, %v1956_v31, %v1960_v29  ;;  %v869_v29 = vrot.slane %v867_v46, 1 }
  0x71   :  { %3094 = vmatprep.subr.bf16.mxu1 %v3301_v52  ;;  %v1976_v57 = vrot.slane %v1974_v42, 1 }
  0x72   :  { %2951 = vmatmul.mubr.bf16.gmra.mrb[8].mxu0 %v3298_v50  ;;  %v1978_v50 = vshrl.u32 %v3321_v30, 16  ;;  %v2004_v30 = vor.u32 %v2002_v58, %v2000_v19 }
  0x73   :  { %3079 = vmatmul.mubr.bf16.gmra.mrb[8].mxu1 %v3300_v55  ;;  %2967 = vmatpush3.bf16.msra.mxu0 %v3299_v51  ;;  %v1982_v51 = vshll.u32 %v3323_v37, 16  ;;  %v833_v55 = vor.u32 %v831_v40, %v829_v33 }
  0x74   :  { %3095 = vmatpush3.bf16.msra.mxu1 %v3301_v52  ;;  %2968 = vmatprep.subr.bf16.mxu0 %v3302_v56  ;;  %v837_v52 = vrot.slane %v835_v38, 1 }
  0x75   :  { %3096 = vmatprep.subr.bf16.mxu1 %v3303_v61  ;;  %2954 = vmatprep.mubr.bf16.mxu0 %v3304_v62  ;;  %v3326_v62 = vld [vmem:[%s3900_s0 + $0x40] sm:$0xff]   ;;  %v1984_v0 = vrot.slane %v1982_v51, 1 }
  0x76   :  { %3082 = vmatprep.mubr.bf16.mxu1 %v3305_v63  ;;  %v841_v60 = vor.u32 %v839_v45, %v837_v52  ;;  %v1980_v63 = vor.u32 %v1978_v50, %v1976_v57  ;;  %v838_v3 = vsel %vm109_vm0, %v833_v55, %v837_v52  ;;  %v859_v11 = vshll.u32 %v3326_v62, 16 }
  0x77   :  { %2969 = vmatpush3.bf16.msra.mxu0 %v3302_v56  ;;  %v1972_v56 = vor.u32 %v1970_v41, %v1968_v36  ;;  %v1988_v25 = vor.u32 %v1986_v8, %v1984_v0 }
  0x78   :  { %3097 = vmatpush3.bf16.msra.mxu1 %v3303_v61  ;;  %2970 = vmatprep.subr.bf16.mxu0 %v3307_v2  ;;  %v845_v61 = vrot.slane %v843_v47, 1  ;;  %v861_v12 = vrot.slane %v859_v11, 1 }
  0x79   :  { %3098 = vmatprep.subr.bf16.mxu1 %v3309_v16  ;;  %v1977_v4 = vsel %vm109_vm0, %v1972_v56, %v1976_v57  ;;  %v1993_v48 = vsel %vm109_vm0, %v1988_v25, %v1992_v23 }
  0x7a   :  { %2955 = vmatmul.mubr.bf16.gmra.mrb[12].mxu0 %v3306_v9  ;;  %v846_v7 = vsel %vm109_vm0, %v841_v60, %v845_v61  ;;  %v855_v9 = vshrl.u32 %v3324_v54, 16  ;;  %v849_v22 = vor.u32 %v847_v5, %v845_v61 }
  0x7b   :  { %3083 = vmatmul.mubr.bf16.gmra.mrb[12].mxu1 %v3308_v15  ;;  %2971 = vmatpush3.bf16.msra.mxu0 %v3307_v2  ;;  %v851_v2 = vshll.u32 %v3324_v54, 16  ;;  %v1985_v15 = vsel %vm109_vm0, %v1980_v63, %v1984_v0 }
  0x7c   :  { %3099 = vmatpush3.bf16.msra.mxu1 %v3309_v16  ;;  %2972 = vmatprep.subr.bf16.mxu0 %v3310_v18  ;;  %v1994_v16 = vshrl.u32 %v3325_v59, 16 }
  0x7d   :  { %3100 = vmatprep.subr.bf16.mxu1 %v3311_v28  ;;  %2974 = vmatprep.mubr.bf16.mxu0 %v814_v53  ;;  %v853_v20 = vrot.slane %v851_v2, 1 }
  0x7e   :  { %3102 = vmatprep.mubr.bf16.mxu1 %v1953_v21  ;;  %v1996_v13 = vor.u32 %v1994_v16, %v1992_v23 }
  0x7f   :  { %2973 = vmatpush3.bf16.msra.mxu0 %v3310_v18  ;;  %v857_v27 = vor.u32 %v855_v9, %v853_v20  ;;  %v3329_v18 = vld [vmem:[%s3900_s0 + $0x98] ss:$0 sps:$4 sm:$0x11]   ;;  %v854_v26 = vsel %vm109_vm0, %v849_v22, %v853_v20 }
  0x80   :  { %3101 = vmatpush3.bf16.msra.mxu1 %v3311_v28  ;;  %v863_v28 = vshrl.u32 %v3326_v62, 16  ;;  %v2006_v10 = vshll.u32 %v3329_v18, 16  ;;  %v2001_v14 = vsel %vm109_vm0, %v1996_v13, %v2000_v19 }
  0x81   :  { %v862_v53 = vsel %vm109_vm0, %v857_v27, %v861_v12 }
  0x82   :  { %2975 = vmatmul.mubr.bf16.vlgmr.msra.gmra.mrb[0].mxu0 %v822_v39  ;;  %v865_v21 = vor.u32 %v863_v28, %v861_v12  ;;  %v2008_v31 = vrot.slane %v2006_v10, 1 }
  0x83   :  { %3103 = vmatmul.mubr.bf16.vlgmr.msra.gmra.mrb[0].mxu1 %v1961_v43  ;;  %2978 = vmatprep.mubr.bf16.mxu0 %v830_v44 }
  0x84   :  { %3106 = vmatprep.mubr.bf16.mxu1 %v1969_v49  ;;  %v870_v32 = vsel %vm109_vm0, %v865_v21, %v869_v29  ;;  %v2009_v33 = vsel %vm109_vm0, %v2004_v30, %v2008_v31 }
  0x8a   :  { %2979 = vmatmul.mubr.bf16.gmra.mrb[4].mxu0 %v838_v3 }
  0x8b   :  { %3107 = vmatmul.mubr.bf16.gmra.mrb[4].mxu1 %v1977_v4  ;;  %2982 = vmatprep.mubr.bf16.mxu0 %v846_v7 }
  0x8c   :  { %3110 = vmatprep.mubr.bf16.mxu1 %v1985_v15 }
  0x92   :  { %2983 = vmatmul.mubr.bf16.gmra.mrb[8].mxu0 %v854_v26 }
  0x93   :  { %3111 = vmatmul.mubr.bf16.gmra.mrb[8].mxu1 %v1993_v48  ;;  %2986 = vmatprep.mubr.bf16.mxu0 %v862_v53 }
  0x94   :  { %3114 = vmatprep.mubr.bf16.mxu1 %v2001_v14 }
  0x9a   :  { %2987 = vmatmul.mubr.bf16.gmra.mrb[12].mxu0 %v870_v32 }
  0x9b   :  { %3115 = vmatmul.mubr.bf16.gmra.mrb[12].mxu1 %v2009_v33 }
 0x155   :  { %v2976_v35 = vpop.f32.mrb[0].mxu0 }
 0x156   :  { %v1048_v36 = vadd.f32 %v2976_v35, %v3817_v34  ;;  %v3104_v37 = vpop.f32.mrb[0].mxu1  ;;  %v961_v38 = vpop.f32.mrb[1].mxu0 }
 0x157   :  { %v2181_v39 = vadd.f32 %v3104_v37, %v3817_v34  ;;  %v1046_v40 = vadd.f32 %v3817_v34, %v961_v38  ;;  %v2100_v41 = vpop.f32.mrb[1].mxu1  ;;  %v2977_v42 = vpop.f32.mrb[2].mxu0 }
 0x158   :  { %v2179_v43 = vadd.f32 %v3817_v34, %v2100_v41  ;;  %v1049_v44 = vadd.f32 %v2977_v42, %v3817_v34  ;;  %v3105_v45 = vpop.f32.mrb[2].mxu1  ;;  %v964_v47 = vpop.f32.mrb[3].mxu0  ;;  %v1064_v52 = vmax.f32 %v1048_v36, 0.0 }
 0x159   :  { %v2182_v49 = vadd.f32 %v3105_v45, %v3817_v34  ;;  %v1047_v50 = vadd.f32 %v3817_v34, %v964_v47  ;;  %v2103_v51 = vpop.f32.mrb[3].mxu1  ;;  %v2197_v56 = vmax.f32 %v2181_v39, 0.0  ;;  %v1062_v57 = vmax.f32 %v1046_v40, 0.0 }
 0x15a   :  { %v1065_v54 = vmax.f32 %v1049_v44, 0.0  ;;  %v2180_v55 = vadd.f32 %v3817_v34, %v2103_v51  ;;  %v2195_v61 = vmax.f32 %v2179_v43, 0.0 }
 0x15b   :  { %v2198_v59 = vmax.f32 %v2182_v49, 0.0  ;;  %v1063_v60 = vmax.f32 %v1047_v50, 0.0 }
 0x15c   :  { %v2647_v62 = vpack.c.bf16 %v1065_v54, %v1064_v52  ;;  %v2196_v63 = vmax.f32 %v2180_v55, 0.0 }
 0x15d   :  { %v2687_v0 = vpack.c.bf16 %v2198_v59, %v2197_v56  ;;  %v2642_v1 = vpack.c.bf16 %v1063_v60, %v1062_v57  ;;  %v2980_v2 = vpop.f32.mrb[4].mxu0 }
 0x15e   :  { %2719 = vst [vmem:[%s3902_s3 + $0x8] sm:$0xff] %v2647_v62   ;;  %v2682_v3 = vpack.c.bf16 %v2196_v63, %v2195_v61  ;;  %v1052_v4 = vadd.f32 %v2980_v2, %v3817_v34  ;;  %v3108_v5 = vpop.f32.mrb[4].mxu1  ;;  %v977_v6 = vpop.f32.mrb[5].mxu0 }
 0x15f   :  { %2727 = vst [vmem:[%s3902_s3 + $0x48] sm:$0xff] %v2687_v0   ;;  %2643 = vst [vmem:[%s3902_s3] sm:$0xff] %v2642_v1   ;;  %v2185_v7 = vadd.f32 %v3108_v5, %v3817_v34  ;;  %v1050_v8 = vadd.f32 %v3817_v34, %v977_v6  ;;  %v2116_v9 = vpop.f32.mrb[5].mxu1  ;;  %v2981_v11 = vpop.f32.mrb[6].mxu0 }
 0x160   :  { %2726 = vst [vmem:[%s3902_s3 + $0x40] sm:$0xff] %v2682_v3   ;;  %v2183_v15 = vadd.f32 %v3817_v34, %v2116_v9  ;;  %v1053_v16 = vadd.f32 %v2981_v11, %v3817_v34  ;;  %v3109_v17 = vpop.f32.mrb[6].mxu1  ;;  %v980_v20 = vpop.f32.mrb[7].mxu0  ;;  %v1068_v25 = vmax.f32 %v1052_v4, 0.0 }
 0x161   :  { %v2186_v22 = vadd.f32 %v3109_v17, %v3817_v34  ;;  %v1051_v23 = vadd.f32 %v3817_v34, %v980_v20  ;;  %v2119_v24 = vpop.f32.mrb[7].mxu1  ;;  %v2201_v18 = vmax.f32 %v2185_v7, 0.0  ;;  %v1066_v13 = vmax.f32 %v1050_v8, 0.0 }
 0x162   :  { %v1069_v27 = vmax.f32 %v1053_v16, 0.0  ;;  %v2184_v12 = vadd.f32 %v3817_v34, %v2119_v24  ;;  %v2199_v28 = vmax.f32 %v2183_v15, 0.0 }
 0x163   :  { %v2202_v19 = vmax.f32 %v2186_v22, 0.0  ;;  %v1067_v26 = vmax.f32 %v1051_v23, 0.0 }
 0x164   :  { %v2657_v46 = vpack.c.bf16 %v1069_v27, %v1068_v25  ;;  %v2200_v48 = vmax.f32 %v2184_v12, 0.0 }
 0x165   :  { %v2697_v53 = vpack.c.bf16 %v2202_v19, %v2201_v18  ;;  %v2652_v58 = vpack.c.bf16 %v1067_v26, %v1066_v13  ;;  %v2984_v10 = vpop.f32.mrb[8].mxu0 }
 0x166   :  { %2721 = vst [vmem:[%s3902_s3 + $0x18] sm:$0xff] %v2657_v46   ;;  %v2692_v14 = vpack.c.bf16 %v2200_v48, %v2199_v28  ;;  %v1056_v21 = vadd.f32 %v2984_v10, %v3817_v34  ;;  %v3112_v29 = vpop.f32.mrb[8].mxu1  ;;  %v993_v30 = vpop.f32.mrb[9].mxu0 }
 0x167   :  { %2729 = vst [vmem:[%s3902_s3 + $0x58] sm:$0xff] %v2697_v53   ;;  %2720 = vst [vmem:[%s3902_s3 + $0x10] sm:$0xff] %v2652_v58   ;;  %v2189_v31 = vadd.f32 %v3112_v29, %v3817_v34  ;;  %v1054_v32 = vadd.f32 %v3817_v34, %v993_v30  ;;  %v2132_v33 = vpop.f32.mrb[9].mxu1  ;;  %v2985_v35 = vpop.f32.mrb[10].mxu0 }
 0x168   :  { %2728 = vst [vmem:[%s3902_s3 + $0x50] sm:$0xff] %v2692_v14   ;;  %v2187_v36 = vadd.f32 %v3817_v34, %v2132_v33  ;;  %v1057_v37 = vadd.f32 %v2985_v35, %v3817_v34  ;;  %v3113_v38 = vpop.f32.mrb[10].mxu1  ;;  %v996_v39 = vpop.f32.mrb[11].mxu0  ;;  %v1072_v43 = vmax.f32 %v1056_v21, 0.0 }
 0x169   :  { %v2190_v40 = vadd.f32 %v3113_v38, %v3817_v34  ;;  %v1055_v41 = vadd.f32 %v3817_v34, %v996_v39  ;;  %v2135_v42 = vpop.f32.mrb[11].mxu1  ;;  %v2205_v47 = vmax.f32 %v2189_v31, 0.0  ;;  %v1070_v49 = vmax.f32 %v1054_v32, 0.0 }
 0x16a   :  { %v1073_v44 = vmax.f32 %v1057_v37, 0.0  ;;  %v2188_v45 = vadd.f32 %v3817_v34, %v2135_v42  ;;  %v2203_v52 = vmax.f32 %v2187_v36, 0.0 }
 0x16b   :  { %v2206_v50 = vmax.f32 %v2190_v40, 0.0  ;;  %v1071_v51 = vmax.f32 %v1055_v41, 0.0 }
 0x16c   :  { %v2667_v54 = vpack.c.bf16 %v1073_v44, %v1072_v43  ;;  %v2204_v55 = vmax.f32 %v2188_v45, 0.0 }
 0x16d   :  { %v2707_v56 = vpack.c.bf16 %v2206_v50, %v2205_v47  ;;  %v2662_v57 = vpack.c.bf16 %v1071_v51, %v1070_v49  ;;  %v2988_v59 = vpop.f32.mrb[12].mxu0 }
 0x16e   :  { %2723 = vst [vmem:[%s3902_s3 + $0x28] sm:$0xff] %v2667_v54   ;;  %v2702_v60 = vpack.c.bf16 %v2204_v55, %v2203_v52  ;;  %v1060_v61 = vadd.f32 %v2988_v59, %v3817_v34  ;;  %v3116_v62 = vpop.f32.mrb[12].mxu1  ;;  %v1009_v63 = vpop.f32.mrb[13].mxu0 }
 0x16f   :  { %2731 = vst [vmem:[%s3902_s3 + $0x68] sm:$0xff] %v2707_v56   ;;  %2722 = vst [vmem:[%s3902_s3 + $0x20] sm:$0xff] %v2662_v57   ;;  %v2193_v0 = vadd.f32 %v3116_v62, %v3817_v34  ;;  %v1058_v1 = vadd.f32 %v3817_v34, %v1009_v63  ;;  %v2148_v2 = vpop.f32.mrb[13].mxu1  ;;  %v2989_v3 = vpop.f32.mrb[14].mxu0 }
 0x170   :  { %2730 = vst [vmem:[%s3902_s3 + $0x60] sm:$0xff] %v2702_v60   ;;  %v2191_v4 = vadd.f32 %v3817_v34, %v2148_v2  ;;  %v1061_v5 = vadd.f32 %v2989_v3, %v3817_v34  ;;  %v3117_v6 = vpop.f32.mrb[14].mxu1  ;;  %v1012_v7 = vpop.f32.mrb[15].mxu0  ;;  %v1076_v15 = vmax.f32 %v1060_v61, 0.0 }
 0x171   :  { %v2194_v8 = vadd.f32 %v3117_v6, %v3817_v34  ;;  %v1059_v9 = vadd.f32 %v3817_v34, %v1012_v7  ;;  %v2151_v11 = vpop.f32.mrb[15].mxu1  ;;  %v2209_v20 = vmax.f32 %v2193_v0, 0.0  ;;  %v1074_v22 = vmax.f32 %v1058_v1, 0.0 }
 0x172   :  { %v1077_v16 = vmax.f32 %v1061_v5, 0.0  ;;  %v2192_v17 = vadd.f32 %v3817_v34, %v2151_v11  ;;  %v2207_v25 = vmax.f32 %v2191_v4, 0.0 }
 0x173   :  { %v2210_v23 = vmax.f32 %v2194_v8, 0.0  ;;  %v1075_v24 = vmax.f32 %v1059_v9, 0.0 }
 0x174   :  { %v2677_v27 = vpack.c.bf16 %v1077_v16, %v1076_v15  ;;  %v2208_v12 = vmax.f32 %v2192_v17, 0.0 }
 0x175   :  { %v2717_v18 = vpack.c.bf16 %v2210_v23, %v2209_v20  ;;  %v2672_v13 = vpack.c.bf16 %v1075_v24, %v1074_v22 }
 0x176   :  { %2725 = vst [vmem:[%s3902_s3 + $0x38] sm:$0xff] %v2677_v27   ;;  %v2712_v19 = vpack.c.bf16 %v2208_v12, %v2207_v25 }
 0x177   :  { %2733 = vst [vmem:[%s3902_s3 + $0x78] sm:$0xff] %v2717_v18   ;;  %2724 = vst [vmem:[%s3902_s3 + $0x30] sm:$0xff] %v2672_v13  }
 0x178   :  { %2732 = vst [vmem:[%s3902_s3 + $0x70] sm:$0xff] %v2712_v19  }

</bundles_post_ra>
